<compile_context>
chip_gen: v5e
topology: v5e:2x2
jax: 0.10.0
libtpu: 0.0.40
codegen_flags: <defaults>
</compile_context>

<pallas_src>
import jax
import jax.numpy as jnp
from jax.experimental import pallas as pl
from jax.experimental.pallas import tpu as pltpu


def _outconv1d_kernel(w_ref, b_ref, x_ref, o_ref):
    # w_ref: (C_out, C_in)   resident in VMEM across the whole grid
    # b_ref: (C_out, 1)      resident, f32; broadcasts along batch & lanes
    # x_ref: (NB, C_in, TL)  one (batch, length) tile in NCL layout
    # o_ref: (NB, C_out, TL)
    nb = x_ref.shape[0]
    w = w_ref[...]
    # Tiny broadcast of the weight enables a clean batched MXU contraction
    # (b,o,c) x (b,c,l) -> (b,o,l): no transposes, lane axis stays last.
    wb = jnp.broadcast_to(w, (nb,) + w.shape)
    acc = jnp.einsum("boc,bcl->bol", wb, x_ref[...],
                     preferred_element_type=jnp.float32)
    # NOTE: every output (batch, lane) depends only on the same input
    # (batch, lane), so ragged/masked boundary tiles are safe.
    o_ref[...] = (acc + b_ref[...][None, :, :]).astype(o_ref.dtype)


def _round_down(x, m):
    return (x // m) * m


def _choose_tiling(N, C_in, C_out, L, itemsize):
    """Pick (NB, TL, vmem_limit_bytes) so each grid step moves multi-MB of HBM
    traffic (amortizing the ~0.35us/step pipeline overhead) while the
    double-buffered working set stays inside VMEM on every generation."""
    try:
        info = pltpu.get_tpu_info()
        vmem_cap = int(getattr(info, "vmem_capacity_bytes", 64 << 20))
    except Exception:
        vmem_cap = 64 << 20  # assume the tightest budget (v7x: 64 MiB / TC)

    if vmem_cap <= (64 << 20):
        # v7x-class: 64 MiB physical / TC, 32 MiB scoped default.
        tile_budget = 16 << 20      # cap on double-buffered x+out working set
        vmem_limit = 32 << 20       # >= 16 MiB headroom under the physical cap
    else:
        # v5e / v6e: 128 MiB physical.  (v5e scoped default is only 16 MiB, so
        # the explicit override below is required there.)
        tile_budget = 32 << 20
        vmem_limit = 48 << 20
    step_bytes_target = tile_budget // 2   # target HBM traffic per grid step

    # Per (batch, lane) column: HBM bytes moved vs. padded VMEM footprint
    # (sublane padding: e.g. C=4 pads to 8 for f32, 16 for bf16).
    sub = max(8, 32 // itemsize)
    cin_p = -(-C_in // sub) * sub
    cout_p = -(-C_out // sub) * sub
    hbm_per_col = (C_in + C_out) * itemsize
    vmem_per_col = 2 * (cin_p + cout_p) * itemsize   # double-buffered x + out

    max_cols = min(step_bytes_target // hbm_per_col,
                   tile_budget // vmem_per_col)
    max_cols = max(128, int(max_cols))

    # Length tile: lane axis, multiple of 128 (or the full extent L).
    if L <= 128 or max_cols >= L:
        TL = L
    else:
        TL = _round_down(max_cols, 128)

    # Batch tile: only grown when one tile already spans all of L, so small-L
    # workloads still reach large DMA steps.  Capped at 256 so the per-step
    # count of tiny batched MXU matmuls stays bounded.
    NB = 1
    if TL == L:
        want_nb = max(1, step_bytes_target // (TL * hbm_per_col))
        cap_nb = max(1, tile_budget // (TL * vmem_per_col))
        NB = int(min(N, want_nb, cap_nb, 256))

    return NB, TL, vmem_limit


def outconv1d(x, weight, bias, *, nb=None, tl=None):
    """Pointwise Conv1d: x (N, C_in, L), weight (C_out, C_in, 1), bias (C_out,).

    Returns (N, C_out, L), matching nn.Conv1d(in_channels, out_channels, 1).
    `nb` / `tl` override the auto-chosen batch/length tile (testing knobs).
    """
    N, C_in, L = x.shape
    C_out = weight.shape[0]
    itemsize = jnp.dtype(x.dtype).itemsize

    NB, TL, vmem_limit = _choose_tiling(N, C_in, C_out, L, itemsize)
    if nb is not None:
        NB = int(nb)
    if tl is not None:
        TL = int(tl)
    NB = max(1, min(NB, N))
    TL = max(1, min(TL, L))

    # Keep the narrowest dtype end-to-end (the op is HBM-bound): the weight
    # travels in the input dtype; the bias stays f32 and is added to the f32
    # accumulator before the final cast.
    w2d = weight[:, :, 0].astype(x.dtype)              # (C_out, C_in)
    b2d = bias.reshape(C_out, 1).astype(jnp.float32)   # (C_out, 1)

    grid = (pl.cdiv(N, NB), pl.cdiv(L, TL))

    cost = pl.CostEstimate(
        flops=2 * N * C_out * C_in * L,
        transcendentals=0,
        bytes_accessed=(N * (C_in + C_out) * L + C_out * C_in) * itemsize
                       + C_out * 4,
    )

    out = pl.pallas_call(
        _outconv1d_kernel,
        out_shape=jax.ShapeDtypeStruct((N, C_out, L), x.dtype),
        grid_spec=pltpu.PrefetchScalarGridSpec(
            num_scalar_prefetch=0,
            grid=grid,
            in_specs=[
                # Weight / bias: constant index_map -> kept resident in VMEM.
                pl.BlockSpec((C_out, C_in), lambda n, l: (0, 0)),
                pl.BlockSpec((C_out, 1), lambda n, l: (0, 0)),
                # Input tile: lane axis = L (lane-dense), NB batches per step.
                pl.BlockSpec((NB, C_in, TL), lambda n, l: (n, 0, l)),
            ],
            out_specs=pl.BlockSpec((NB, C_out, TL), lambda n, l: (n, 0, l)),
        ),
        compiler_params=pltpu.CompilerParams(
            # No reduction axis -> both grid axes parallel (megacore sharding).
            # If a v7x profile shows one TC idle, switch the batch axis to
            # pltpu.CORE_PARALLEL.
            dimension_semantics=("parallel", "parallel"),
            vmem_limit_bytes=vmem_limit,
        ),
        cost_estimate=cost,
    )(w2d, b2d, x)

    return out


if __name__ == "__main__":
    key = jax.random.PRNGKey(0)
    k_x, k_w, k_b = jax.random.split(key, 3)

    # Small shapes consistent with OutConv1D(in_channels=4, out_channels=8).
    N, C_in, C_out, L = 2, 4, 8, 16
    x = jax.random.normal(k_x, (N, C_in, L), dtype=jnp.float32)

    # Deterministic parameter init (same shapes as nn.Conv1d(C_in, C_out, 1)).
    bound = 1.0 / jnp.sqrt(C_in * 1.0)
    weight = jax.random.uniform(k_w, (C_out, C_in, 1), dtype=jnp.float32,
                                minval=-bound, maxval=bound)
    bias = jax.random.uniform(k_b, (C_out,), dtype=jnp.float32,
                              minval=-bound, maxval=bound)

    out = outconv1d(x, weight, bias)
    jax.block_until_ready(out)

    ref = jnp.einsum("ncl,oc->nol", x, weight[:, :, 0]) + bias[None, :, None]
    assert out.shape == (N, C_out, L)
    assert jnp.allclose(out, ref, atol=1e-5, rtol=1e-5)

    # Second check: forced small tiles exercise ragged batch / length blocks
    # (masked writeback) and the batched-matmul path with NB > 1.
    N2, L2 = 3, 200
    x2 = jax.random.normal(k_x, (N2, C_in, L2), dtype=jnp.float32)
    out2 = outconv1d(x2, weight, bias, nb=2, tl=128)
    jax.block_until_ready(out2)
    ref2 = jnp.einsum("ncl,oc->nol", x2, weight[:, :, 0]) + bias[None, :, None]
    assert out2.shape == (N2, C_out, L2)
    assert jnp.allclose(out2, ref2, atol=1e-5, rtol=1e-5)

    print("KERNEL_OK")
</pallas_src>

<mosaic_0001>
module attributes {stable_mosaic.version = 11 : i64} {
  func.func @_outconv1d_kernel(%arg0: i32, %arg1: i32, %arg2: memref<8x4xf32, #tpu.memory_space<vmem>>, %arg3: memref<8x1xf32, #tpu.memory_space<vmem>>, %arg4: memref<2x4x16xf32, #tpu.memory_space<vmem>>, %arg5: memref<2x8x16xf32, #tpu.memory_space<vmem>>) attributes {dimension_semantics = [#tpu.dimension_semantics<parallel>, #tpu.dimension_semantics<parallel>], iteration_bounds = array<i64: 1, 1>, scalar_prefetch = 0 : i64, scratch_operands = 0 : i64, tpu.core_type = #tpu.core_type<tc>, window_params = [{pipeline_mode = #tpu.pipeline_mode<synchronous>, transform_indices = @transform_0, window_bounds = array<i64: 8, 4>}, {pipeline_mode = #tpu.pipeline_mode<synchronous>, transform_indices = @transform_1, window_bounds = array<i64: 8, 1>}, {transform_indices = @transform_2, window_bounds = array<i64: 2, 4, 16>}, {transform_indices = @transform_3, window_bounds = array<i64: 2, 8, 16>}]} {
    %c0 = arith.constant 0 : index
    %c0_0 = arith.constant 0 : index
    %0 = vector.load %arg2[%c0, %c0_0] : memref<8x4xf32, #tpu.memory_space<vmem>>, vector<8x4xf32>
    %1 = vector.shape_cast %0 : vector<8x4xf32> to vector<1x8x4xf32>
    %2 = vector.broadcast %1 : vector<1x8x4xf32> to vector<2x8x4xf32>
    %c0_1 = arith.constant 0 : index
    %c0_2 = arith.constant 0 : index
    %c0_3 = arith.constant 0 : index
    %3 = vector.load %arg4[%c0_1, %c0_2, %c0_3] : memref<2x4x16xf32, #tpu.memory_space<vmem>>, vector<2x4x16xf32>
    "tpu.trace_start"() <{level = 10 : i32, message = "boc,bcl->bol"}> : () -> ()
    %cst = arith.constant dense<0.000000e+00> : vector<2x8x16xf32>
    %4 = tpu.matmul %2, %3, %cst {dimension_numbers = #tpu.dot_dimension_numbers<[2], [1], [1], [2], [0, 0, 0, 1, 1, 2], [0], [0]>} : vector<2x8x4xf32>, vector<2x4x16xf32>, vector<2x8x16xf32> -> vector<2x8x16xf32>
    "tpu.trace_stop"() : () -> ()
    %c0_4 = arith.constant 0 : index
    %c0_5 = arith.constant 0 : index
    %5 = vector.load %arg3[%c0_4, %c0_5] : memref<8x1xf32, #tpu.memory_space<vmem>>, vector<8x1xf32>
    %6 = vector.shape_cast %5 : vector<8x1xf32> to vector<1x8x1xf32>
    %7 = vector.broadcast %6 : vector<1x8x1xf32> to vector<2x8x16xf32>
    %8 = arith.addf %4, %7 : vector<2x8x16xf32>
    %c0_6 = arith.constant 0 : index
    %c0_7 = arith.constant 0 : index
    %c0_8 = arith.constant 0 : index
    %9 = vector.load %arg5[%c0_6, %c0_7, %c0_8] : memref<2x8x16xf32, #tpu.memory_space<vmem>>, vector<2x8x16xf32>
    tpu.vector_store %arg5[%c0_6, %c0_7, %c0_8], %8 {strides = array<i32>} : memref<2x8x16xf32, #tpu.memory_space<vmem>>, vector<2x8x16xf32>,
    return
  }
  func.func @transform_0(%arg0: i32, %arg1: i32) -> (i32, i32) {
    %c0_i32 = arith.constant 0 : i32
    %c0_i32_0 = arith.constant 0 : i32
    %c0_i32_1 = arith.constant 0 : i32
    return %c0_i32, %c0_i32_0 : i32, i32
  }
  func.func @transform_1(%arg0: i32, %arg1: i32) -> (i32, i32) {
    %c0_i32 = arith.constant 0 : i32
    %c0_i32_0 = arith.constant 0 : i32
    %c0_i32_1 = arith.constant 0 : i32
    return %c0_i32, %c0_i32_0 : i32, i32
  }
  func.func @transform_2(%arg0: i32, %arg1: i32) -> (i32, i32, i32) {
    %c0_i32 = arith.constant 0 : i32
    %c0_i32_0 = arith.constant 0 : i32
    return %arg0, %c0_i32, %arg1 : i32, i32, i32
  }
  func.func @transform_3(%arg0: i32, %arg1: i32) -> (i32, i32, i32) {
    %c0_i32 = arith.constant 0 : i32
    %c0_i32_0 = arith.constant 0 : i32
    return %arg0, %c0_i32, %arg1 : i32, i32, i32
  }
}

</mosaic_0001>

<bundles_post_ra>
// kernel: tpu_custom_call.1
= control target key start
LH: loop header
LB: loop body
LE: loop exit
PB: predicated region body
PF: predicated region fallthrough
CT: control target
= control target key end

     0   :  { %vm28_vm0 = vcmask 1043456   ;;  %vm24_vm1 = vcmask 31744   ;;  %s170_s0 = inlined_call_operand.vmem [shape: f32[8,4], index: 0, kind: input, shape index: {}]   ;;  %s171_s1 = inlined_call_operand.vmem [shape: f32[8,1], index: 1, kind: input, shape index: {}]   ;;  %s172_s2 = inlined_call_operand.vmem [shape: f32[2,4,16], index: 2, kind: input, shape index: {}]   ;;  %s173_s3 = inlined_call_operand.hbm [shape: f32[2,8,16], index: 3, kind: output, shape index: {}]  }
   0x1   :  { %v16_v0 = vld [vmem:[%s172_s2] sm:$0xf]  ;;  %v17_v1 = vld [vmem:[%s172_s2 + $0x4] sm:$0xf] }
   0x2   :  { %v15_v2 = vld [vmem:[%s170_s0] sm:$0xff]  ;;  %96 = vmatpush.msk.msra.mxu0 %vm28_vm0, %v16_v0  ;;  %98 = vmatpush.msk.msra.mxu1 %vm28_vm0, %v17_v1 }
   0x3   :  { %v18_v3 = vld [vmem:[%s171_s1] sm:$0xff] }
   0x4   :  { %8 = vsyncpa [#allocation3], 0  ;;  %97 = vmatmul.msk.f32.vlgmr.msra.gmra.mxu0 %vm24_vm1, %v15_v2  ;;  %99 = vmatmul.msk.f32.vlgmr.msra.gmra.mxu1 %vm24_vm1, %v15_v2  ;;  %v131_v4 = vmov 0   ;;  %s132_s20 = smov [#allocation2]   ;;  %s84_s0 = sshll.u32 %s173_s3, 4  ;;  %vm75_vm2 = vcmask 130048   ;;  %s85_s0 = int_to_ptr.hbm [resolvable:$true] %s84_s0 }
   0x5   :  { %104 = vset.pattern.permute.xlu0 %v131_v4  ;;  %s82_s2 = sshll.u32 %s132_s20, 4  ;;  %s133_s1 = smov 128   ;;  %s83_s2 = int_to_ptr.vmem [resolvable:$true] %s82_s2 }
   0x6   :  { %21 = vperm.xlu0 %104, %v18_v3   ;;  %s134_s23 = smov 8  }
  0x78   :  { %v22_v5 = vpop.permute.xlu0 %21 }
  0x81   :  { %v49_v6 = vpop.f32.mrf.mxu0  ;;  %v72_v7 = vpop.f32.mrf.mxu1 }
  0x82   :  { %v50_v8 = vadd.f32 %v49_v6, %v22_v5  ;;  %v73_v9 = vadd.f32 %v72_v7, %v22_v5 }
  0x84   :  { %76 = vst.msk [vmem:[#allocation2] sm:$0xff] %vm75_vm2, %v50_v8 }
  0x85   :  { %77 = vst.msk [vmem:[#allocation2 + $0x8] sm:$0xff] %vm75_vm2, %v73_v9 }
  0x86   :  { %90 = dma.vmem_to_hbm [thread:$0]  %s83_s2, 256, %s85_s0, [#allocation3], %s133_s1, %s133_s1, %s134_s23  }
  0x87   :  { %129 = dma.done.wait [#allocation3], 256  }
  0x88   :  { %130 = vsyncadd [#allocation3], 4294967040 }
  0x89   :  { %95 = vsyncpa [#allocation3], 1 }

</bundles_post_ra>
